<compile_context>
chip_gen: v7x
topology: tpu7x:2x2x1
jax: 0.10.0
libtpu: 0.0.40
codegen_flags: <defaults>
</compile_context>

<pallas_src>
import functools

import jax
import jax.numpy as jnp
from jax.experimental import pallas as pl
from jax.experimental.pallas import tpu as pltpu


# --------------------------------------------------------------------------- #
# Small helpers
# --------------------------------------------------------------------------- #
def _round_up(x: int, m: int) -> int:
    return ((x + m - 1) // m) * m


def _pick_tile(padded: int, max_tile: int, align: int = 128) -> int:
    """Largest multiple of `align` that divides `padded` and is <= max_tile."""
    max_tile = max(align, min(max_tile, padded))
    best, t = align, align
    while t <= max_tile:
        if padded % t == 0:
            best = t
        t += align
    return best


def _choose_m_tile(batch: int):
    """Pick an M tile (<=512) that minimizes padding waste for large batches."""
    best_t, best_pad = 128, _round_up(batch, 128)
    for t in (512, 384, 256, 128):
        mp = _round_up(batch, t)
        if mp < best_pad or (mp == best_pad and t > best_t):
            best_t, best_pad = t, mp
    return best_t, best_pad


def _vmem_limits():
    """Generation-aware VMEM limit + tile-footprint budget."""
    cap = None
    try:
        cap = int(pltpu.get_tpu_info().vmem_capacity_bytes)
    except Exception:
        cap = None
    if cap is None or cap <= 0:
        limit = 48 * 1024 * 1024            # conservative default
    elif cap <= 64 * 1024 * 1024:           # v7x-class: 64 MiB per TensorCore
        limit = 48 * 1024 * 1024
    else:                                    # v5e / v6e: 128 MiB per core
        limit = 96 * 1024 * 1024
    return limit, int(limit * 0.8)           # leave headroom for compiler scratch


def _tiles_fit(tm: int, tn: int, tk: int, budget: int, w_bufs: int = 2) -> bool:
    x_bytes = 2 * tm * tk * 2          # bf16 x tile, double-buffered
    w_bytes = w_bufs * tk * tn * 2     # bf16 weight tile
    o_bytes = 2 * tm * tn * 4          # f32 output / accumulator tile
    v_bytes = 2 * 2 * tn * 4           # up to two (1, tn) f32 epilogue vectors
    return x_bytes + w_bytes + o_bytes + v_bytes <= budget


def _pad_cast(a, rows: int, cols: int, dtype):
    """Cast and/or pad only when actually necessary (skip redundant passes)."""
    if a.dtype != dtype:
        a = a.astype(dtype)
    r, c = a.shape
    if r != rows or c != cols:
        a = jnp.pad(a, ((0, rows - r), (0, cols - c)))
    return a


def _weight_spec(tk: int, tn: int, bufs: int):
    idx = lambda i, j, k: (k, j)
    if bufs > 2 and hasattr(pl, "Buffered"):
        try:
            return pl.BlockSpec((tk, tn), idx, pipeline_mode=pl.Buffered(bufs))
        except TypeError:
            pass
    return pl.BlockSpec((tk, tn), idx)


# --------------------------------------------------------------------------- #
# Kernels
# --------------------------------------------------------------------------- #
def _accum_step(x_ref, w_ref, o_ref):
    """Accumulate one K step directly into the resident f32 output block."""
    k = pl.program_id(2)

    @pl.when(k == 0)
    def _():
        o_ref[...] = jnp.zeros_like(o_ref)

    o_ref[...] += jnp.dot(x_ref[...], w_ref[...],
                          preferred_element_type=jnp.float32)
    return k == pl.num_programs(2) - 1


def _matmul_kernel(x_ref, w_ref, o_ref):
    _accum_step(x_ref, w_ref, o_ref)


def _matmul_bias_kernel(x_ref, w_ref, bias_ref, o_ref):
    last = _accum_step(x_ref, w_ref, o_ref)

    @pl.when(last)
    def _():
        o_ref[...] = o_ref[...] + bias_ref[...]


def _matmul_bn_kernel(x_ref, w_ref, gamma_ref, beta_ref, o_ref, *, eps, batch):
    """Fused BN: the full (padded) batch is resident in this single M block."""
    last = _accum_step(x_ref, w_ref, o_ref)

    @pl.when(last)
    def _():
        y = o_ref[...]
        inv_b = 1.0 / float(batch)
        mean = jnp.sum(y, axis=0, keepdims=True) * inv_b     # padded rows are 0
        # Two-pass variance in f32; mask out padded rows (they are zero, which
        # would otherwise bias the centered sum).  Numerically safe vs E[x^2]-E[x]^2.
        row = jax.lax.broadcasted_iota(jnp.int32, y.shape, 0)
        centered = jnp.where(row < batch, y - mean, 0.0)
        var = jnp.sum(centered * centered, axis=0, keepdims=True) * inv_b
        scale = gamma_ref[...] * jax.lax.rsqrt(var + eps)
        shift = beta_ref[...] - mean * scale
        o_ref[...] = y * scale + shift


def _scale_shift_kernel(y_ref, scale_ref, shift_ref, o_ref):
    o_ref[...] = y_ref[...] * scale_ref[...] + shift_ref[...]


# --------------------------------------------------------------------------- #
# pallas_call builders
# --------------------------------------------------------------------------- #
def _matmul_call(kernel, xp, wp, vecs, *, m_pad, n_pad, k_pad, tm, tn, tk,
                 vmem_limit, w_bufs):
    grid = (m_pad // tm, n_pad // tn, k_pad // tk)
    in_specs = [pl.BlockSpec((tm, tk), lambda i, j, k: (i, k)),
                _weight_spec(tk, tn, w_bufs)]
    in_specs += [pl.BlockSpec((1, tn), lambda i, j, k: (0, j)) for _ in vecs]

    cost = pl.CostEstimate(
        flops=2 * m_pad * n_pad * k_pad,
        transcendentals=0,
        bytes_accessed=int(xp.size) * 2 * grid[1]
                       + int(wp.size) * 2 * grid[0]
                       + m_pad * n_pad * 4
                       + sum(int(v.size) for v in vecs) * 4 * grid[0],
    )
    return pl.pallas_call(
        kernel,
        out_shape=jax.ShapeDtypeStruct((m_pad, n_pad), jnp.float32),
        grid_spec=pltpu.PrefetchScalarGridSpec(
            num_scalar_prefetch=0,
            grid=grid,
            in_specs=in_specs,
            out_specs=pl.BlockSpec((tm, tn), lambda i, j, k: (i, j)),
        ),
        compiler_params=pltpu.CompilerParams(
            dimension_semantics=("parallel", "parallel", "arbitrary"),
            vmem_limit_bytes=int(vmem_limit),
        ),
        cost_estimate=cost,
    )(xp, wp, *vecs)


def _scale_shift_call(y, scale, shift, *, tm, tn, vmem_limit):
    m_pad, n_pad = y.shape
    grid = (m_pad // tm, n_pad // tn)
    return pl.pallas_call(
        _scale_shift_kernel,
        out_shape=jax.ShapeDtypeStruct((m_pad, n_pad), jnp.float32),
        grid_spec=pltpu.PrefetchScalarGridSpec(
            num_scalar_prefetch=0,
            grid=grid,
            in_specs=[pl.BlockSpec((tm, tn), lambda i, j: (i, j)),
                      pl.BlockSpec((1, tn), lambda i, j: (0, j)),
                      pl.BlockSpec((1, tn), lambda i, j: (0, j))],
            out_specs=pl.BlockSpec((tm, tn), lambda i, j: (i, j)),
        ),
        compiler_params=pltpu.CompilerParams(
            dimension_semantics=("parallel", "parallel"),
            vmem_limit_bytes=int(vmem_limit),
        ),
    )(y, scale, shift)


# --------------------------------------------------------------------------- #
# Forward wrapper (LinearLayer semantics)
# --------------------------------------------------------------------------- #
def linear_layer_forward(x, w_t, b=None, gamma=None, beta=None, *,
                         use_bias=True, use_bn=False, eps=1e-5, bn_fused=None):
    """Pallas forward for LinearLayer.

    x:     (B, in_features)            f32 activations
    w_t:   (in_features, out_features) PyTorch weight (out,in) transposed;
                                       ideally stored persistently as bf16.
    b:     (1, out_features)           bias (ignored when use_bn=True, as in
                                       the PyTorch module)
    gamma: (1, out_features)           BN weight
    beta:  (1, out_features)           BN bias
    bn_fused: None=auto, True/False force the fused vs. tiled-M BN path.
    """
    B, K = x.shape
    Kw, N = w_t.shape
    assert K == Kw

    n_pad = _round_up(N, 128)
    k_pad = _round_up(K, 128)
    vmem_limit, budget = _vmem_limits()

    # ---- M tiling ----------------------------------------------------------
    if use_bn and bn_fused is None:
        # Fuse BN whenever the full batch fits one M block within the budget.
        bn_fused = _tiles_fit(_round_up(B, 16), 128, 128, budget)
    if not use_bn:
        bn_fused = False

    if bn_fused or B <= 512:
        tm = _round_up(B, 16)          # bf16 packs 16 rows per sublane tile
        m_pad = tm
    else:
        tm, m_pad = _choose_m_tile(B)

    # ---- N / K tiling (largest tiles that fit the VMEM budget) --------------
    tn_max, tk_max = 1024, 2048
    if m_pad == tm and n_pad >= 256:
        # grid_m == 1: guarantee >= 2 N tiles so a 2-TC chip (v7x) stays busy.
        tn_max = min(tn_max, (n_pad // 2) // 128 * 128)
    tn = _pick_tile(n_pad, tn_max)
    tk = _pick_tile(k_pad, tk_max)
    while not _tiles_fit(tm, tn, tk, budget):
        if tk >= tn and tk > 128:
            tk = _pick_tile(k_pad, tk // 2)
        elif tn > 128:
            tn = _pick_tile(n_pad, tn // 2)
        else:
            break

    k_steps = k_pad // tk
    w_bufs = 3 if (k_steps >= 3 and _tiles_fit(tm, tn, tk, budget, w_bufs=3)) else 2

    # ---- operand prep (skip redundant pad / cast passes) --------------------
    xp = _pad_cast(x, m_pad, k_pad, jnp.bfloat16)
    wp = _pad_cast(w_t, k_pad, n_pad, jnp.bfloat16)

    call = functools.partial(_matmul_call, m_pad=m_pad, n_pad=n_pad, k_pad=k_pad,
                             tm=tm, tn=tn, tk=tk, vmem_limit=vmem_limit,
                             w_bufs=w_bufs)

    if use_bn:
        gp = _pad_cast(jnp.reshape(gamma, (1, -1)), 1, n_pad, jnp.float32)
        betap = _pad_cast(jnp.reshape(beta, (1, -1)), 1, n_pad, jnp.float32)
        if bn_fused:
            kernel = functools.partial(_matmul_bn_kernel, eps=float(eps),
                                       batch=int(B))
            out = call(kernel, xp, wp, (gp, betap))
        else:
            # Tiled-M fallback: pure matmul, then f32 two-pass batch stats and a
            # second elementwise Pallas pass applying scale/shift.
            y = call(_matmul_kernel, xp, wp, ())
            yb = y[:B]
            mean = jnp.mean(yb, axis=0, keepdims=True)
            var = jnp.mean(jnp.square(yb - mean), axis=0, keepdims=True)
            scale = gp * jax.lax.rsqrt(var + eps)
            shift = betap - mean * scale
            out = _scale_shift_call(y, scale, shift, tm=tm, tn=tn,
                                    vmem_limit=vmem_limit)
    elif use_bias:
        bp = _pad_cast(jnp.reshape(b, (1, -1)), 1, n_pad, jnp.float32)
        out = call(_matmul_bias_kernel, xp, wp, (bp,))
    else:
        out = call(_matmul_kernel, xp, wp, ())

    return out[:B, :N]


# --------------------------------------------------------------------------- #
# Reference (same bf16 operands / f32 accumulation contract as the kernel)
# --------------------------------------------------------------------------- #
def _reference(x, w_t, b, gamma, beta, *, use_bias, use_bn, eps=1e-5):
    y = jnp.dot(x.astype(jnp.bfloat16), w_t.astype(jnp.bfloat16),
                preferred_element_type=jnp.float32)
    if use_bn:
        mean = jnp.mean(y, axis=0, keepdims=True)
        var = jnp.mean((y - mean) ** 2, axis=0, keepdims=True)
        y = (y - mean) * jax.lax.rsqrt(var + eps)
        y = y * gamma.reshape(1, -1) + beta.reshape(1, -1)
    elif use_bias:
        y = y + b.reshape(1, -1)
    return y


if __name__ == "__main__":
    key = jax.random.PRNGKey(0)
    k_x, k_w, k_b = jax.random.split(key, 3)

    batch, in_features, out_features = 8, 32, 64

    # Deterministic parameter init (mimics nn.Linear's U(-1/sqrt(in), 1/sqrt(in))).
    bound = 1.0 / (in_features ** 0.5)
    w = jax.random.uniform(k_w, (out_features, in_features),
                           minval=-bound, maxval=bound, dtype=jnp.float32)
    b = jax.random.uniform(k_b, (1, out_features),
                           minval=-bound, maxval=bound, dtype=jnp.float32)
    # Keep the transposed weight persistently in bf16 (what the kernel streams),
    # so no full-weight cast pass happens per call.
    w_t_f32 = w.T
    w_t = w_t_f32.astype(jnp.bfloat16)

    # BatchNorm1d params (default init: gamma=1, beta=0).
    gamma = jnp.ones((1, out_features), dtype=jnp.float32)
    beta = jnp.zeros((1, out_features), dtype=jnp.float32)

    x = jax.random.normal(k_x, (batch, in_features), dtype=jnp.float32)

    cases = [
        dict(use_bias=True, use_bn=False),
        dict(use_bias=False, use_bn=False),
        dict(use_bias=True, use_bn=True),                 # fused BN path
        dict(use_bias=True, use_bn=True, bn_fused=False),  # tiled-M / 2-pass BN path
    ]
    ok = True
    for cfg in cases:
        out = linear_layer_forward(x, w_t, b, gamma, beta, **cfg)
        out = jax.block_until_ready(out)
        ref = _reference(x, w_t_f32, b, gamma, beta,
                         use_bias=cfg["use_bias"], use_bn=cfg["use_bn"])
        ok = ok and bool(jnp.allclose(out, ref, atol=2e-3, rtol=2e-3))

    if ok:
        print("KERNEL_OK")
</pallas_src>

<mosaic_0001>
module attributes {stable_mosaic.version = 11 : i64} {
  func.func @_matmul_bias_kernel(%arg0: i32, %arg1: i32, %arg2: i32, %arg3: memref<16x128xbf16, #tpu.memory_space<vmem>>, %arg4: memref<128x128xbf16, #tpu.memory_space<vmem>>, %arg5: memref<1x128xf32, #tpu.memory_space<vmem>>, %arg6: memref<16x128xf32, #tpu.memory_space<vmem>>) attributes {dimension_semantics = [#tpu.dimension_semantics<parallel>, #tpu.dimension_semantics<parallel>, #tpu.dimension_semantics<arbitrary>], iteration_bounds = array<i64: 1, 1, 1>, scalar_prefetch = 0 : i64, scratch_operands = 0 : i64, tpu.core_type = #tpu.core_type<tc>, window_params = [{transform_indices = @transform_0, window_bounds = array<i64: 16, 128>}, {transform_indices = @transform_1, window_bounds = array<i64: 128, 128>}, {transform_indices = @transform_2, window_bounds = array<i64: 1, 128>}, {transform_indices = @transform_3, window_bounds = array<i64: 16, 128>}]} {
    %c0_i32 = arith.constant 0 : i32
    %0 = arith.cmpi eq, %arg2, %c0_i32 : i32
    %1 = arith.extui %0 : i1 to i32
    %c0_i32_0 = arith.constant 0 : i32
    %2 = arith.cmpi ne, %1, %c0_i32_0 : i32
    scf.if %2 {
      %cst_10 = arith.constant 0.000000e+00 : f32
      %12 = vector.broadcast %cst_10 : f32 to vector<16x128xf32>
      %c0_11 = arith.constant 0 : index
      %c0_12 = arith.constant 0 : index
      %13 = vector.load %arg6[%c0_11, %c0_12] : memref<16x128xf32, #tpu.memory_space<vmem>>, vector<16x128xf32>
      tpu.vector_store %arg6[%c0_11, %c0_12], %12 {strides = array<i32>} : memref<16x128xf32, #tpu.memory_space<vmem>>, vector<16x128xf32>,
    } else {
    }
    %c0 = arith.constant 0 : index
    %c0_1 = arith.constant 0 : index
    %3 = vector.load %arg6[%c0, %c0_1] : memref<16x128xf32, #tpu.memory_space<vmem>>, vector<16x128xf32>
    %c0_2 = arith.constant 0 : index
    %c0_3 = arith.constant 0 : index
    %4 = vector.load %arg3[%c0_2, %c0_3] : memref<16x128xbf16, #tpu.memory_space<vmem>>, vector<16x128xbf16>
    %c0_4 = arith.constant 0 : index
    %c0_5 = arith.constant 0 : index
    %5 = vector.load %arg4[%c0_4, %c0_5] : memref<128x128xbf16, #tpu.memory_space<vmem>>, vector<128x128xbf16>
    %cst = arith.constant dense<0.000000e+00> : vector<16x128xf32>
    %6 = tpu.matmul %4, %5, %cst {dimension_numbers = #tpu.dot_dimension_numbers<[1], [0], [0], [1], [0, 0, 1, 1], [], []>} : vector<16x128xbf16>, vector<128x128xbf16>, vector<16x128xf32> -> vector<16x128xf32>
    %7 = arith.addf %3, %6 : vector<16x128xf32>
    %c0_6 = arith.constant 0 : index
    %c0_7 = arith.constant 0 : index
    %8 = vector.load %arg6[%c0_6, %c0_7] : memref<16x128xf32, #tpu.memory_space<vmem>>, vector<16x128xf32>
    tpu.vector_store %arg6[%c0_6, %c0_7], %7 {strides = array<i32>} : memref<16x128xf32, #tpu.memory_space<vmem>>, vector<16x128xf32>,
    %c0_i32_8 = arith.constant 0 : i32
    %9 = arith.cmpi eq, %arg2, %c0_i32_8 : i32
    %10 = arith.extui %9 : i1 to i32
    %c0_i32_9 = arith.constant 0 : i32
    %11 = arith.cmpi ne, %10, %c0_i32_9 : i32
    scf.if %11 {
      %c0_10 = arith.constant 0 : index
      %c0_11 = arith.constant 0 : index
      %12 = vector.load %arg6[%c0_10, %c0_11] : memref<16x128xf32, #tpu.memory_space<vmem>>, vector<16x128xf32>
      %c0_12 = arith.constant 0 : index
      %c0_13 = arith.constant 0 : index
      %13 = vector.load %arg5[%c0_12, %c0_13] : memref<1x128xf32, #tpu.memory_space<vmem>>, vector<1x128xf32>
      %14 = vector.broadcast %13 : vector<1x128xf32> to vector<16x128xf32>
      %15 = arith.addf %12, %14 : vector<16x128xf32>
      %c0_14 = arith.constant 0 : index
      %c0_15 = arith.constant 0 : index
      %16 = vector.load %arg6[%c0_14, %c0_15] : memref<16x128xf32, #tpu.memory_space<vmem>>, vector<16x128xf32>
      tpu.vector_store %arg6[%c0_14, %c0_15], %15 {strides = array<i32>} : memref<16x128xf32, #tpu.memory_space<vmem>>, vector<16x128xf32>,
    } else {
    }
    return
  }
  func.func @transform_0(%arg0: i32, %arg1: i32, %arg2: i32) -> (i32, i32) {
    %c0_i32 = arith.constant 0 : i32
    return %arg0, %arg2 : i32, i32
  }
  func.func @transform_1(%arg0: i32, %arg1: i32, %arg2: i32) -> (i32, i32) {
    %c0_i32 = arith.constant 0 : i32
    return %arg2, %arg1 : i32, i32
  }
  func.func @transform_2(%arg0: i32, %arg1: i32, %arg2: i32) -> (i32, i32) {
    %c0_i32 = arith.constant 0 : i32
    %c0_i32_0 = arith.constant 0 : i32
    return %c0_i32, %arg1 : i32, i32
  }
  func.func @transform_3(%arg0: i32, %arg1: i32, %arg2: i32) -> (i32, i32) {
    %c0_i32 = arith.constant 0 : i32
    return %arg0, %arg1 : i32, i32
  }
}

</mosaic_0001>

<bundles_post_ra>
// kernel: tpu_custom_call.1
= control target key start
LH: loop header
LB: loop body
LE: loop exit
PB: predicated region body
PF: predicated region fallthrough
CT: control target
= control target key end

     0   :  { %8 = vsyncpa [#allocation3], 0  ;;  %s400_s0 = inlined_call_operand.hbm [shape: bf16[16,128], index: 0, kind: input, shape index: {}]   ;;  %s401_s1 = inlined_call_operand.hbm [shape: bf16[128,128], index: 1, kind: input, shape index: {}]   ;;  %s402_s2 = inlined_call_operand.vmem [shape: f32[1,128], index: 2, kind: input, shape index: {}]   ;;  %s403_s3 = inlined_call_operand.hbm [shape: f32[16,128], index: 3, kind: output, shape index: {}]  }
   0x1   :  { %9 = vsyncpa [#allocation6], 0 }
   0x2   :  { %10 = vsyncpa [#allocation4], 0  ;;  %s332_s12 = smov [#allocation2]   ;;  %s260_s16 = scalar_lea.hbm %s400_s0, 128 }
   0x3   :  { %s16_s13 = sshll.u32 %s332_s12, 4  ;;  %p261_p0 = scmp.ne.s32.totalorder %s400_s0, %s260_s16  ;;  %s17_s13 = int_to_ptr.vmem [resolvable:$true] %s16_s13 }
   0x4   :  { %p264_p1 = scmp.lt.u32.totalorder %s260_s16, %s400_s0 }
   0x6   :  { %p266_p2 = pnand %p264_p1, %p261_p0 }
   0x8   :  { %269 = shalt.err (!%p266_p2)
}
   0x9   :  { %s270_s21 = scalar_lea.vmem %s17_s13, 128  ;;  %p275_p4 = scmp.lt.s32.totalorder %s17_s13, %s17_s13 }
   0xa   :  { %p271_p3 = scmp.ne.s32.totalorder %s17_s13, %s270_s21  ;;  %p276_p5 = scmp.lt.s32.totalorder %s270_s21, %s270_s21 }
   0xc   :  { %p277_p6 = por %p276_p5, %p275_p4 }
   0xe   :  { %p278_p7 = pnand %p277_p6, %p271_p3 }
  0x10   :  { %281 = shalt.err (!%p278_p7)
}
  0x11   :  { %s333_s22 = smov 64   ;;  %s334_s23 = smov 4  }
  0x12   :  { %22 = dma.hbm_to_vmem [thread:$0]  %s400_s0, 128, %s17_s13, [#allocation3], %s333_s22, %s333_s22, %s334_s23  }
  0x13   :  { %s335_s26 = smov [#allocation5]   ;;  %s282_s30 = scalar_lea.hbm %s401_s1, 1024 }
  0x14   :  { %s28_s27 = sshll.u32 %s335_s26, 4  ;;  %p283_p8 = scmp.ne.s32.totalorder %s401_s1, %s282_s30  ;;  %s29_s27 = int_to_ptr.vmem [resolvable:$true] %s28_s27 }
  0x15   :  { %p286_p9 = scmp.lt.u32.totalorder %s282_s30, %s401_s1 }
  0x17   :  { %p288_p10 = pnand %p286_p9, %p283_p8 }
  0x19   :  { %291 = shalt.err (!%p288_p10)
}
  0x1a   :  { %s292_s8 = scalar_lea.vmem %s29_s27, 1024  ;;  %p297_p12 = scmp.lt.s32.totalorder %s29_s27, %s29_s27 }
  0x1b   :  { %p293_p11 = scmp.ne.s32.totalorder %s29_s27, %s292_s8  ;;  %p298_p13 = scmp.lt.s32.totalorder %s292_s8, %s292_s8 }
  0x1d   :  { %p299_p0 = por %p298_p13, %p297_p12 }
  0x1f   :  { %p300_p1 = pnand %p299_p0, %p293_p11 }
  0x21   :  { %303 = shalt.err (!%p300_p1)
}
  0x22   :  { %34 = dma.hbm_to_vmem [thread:$0]  %s401_s1, 1024, %s29_s27, [#allocation6], %s333_s22, %s333_s22, %s334_s23  }
  0x23   :  { %326 = dma.done.wait [#allocation3], 128  }
  0x24   :  { %327 = vsyncadd [#allocation3], 4294967168 }
  0x25   :  { %328 = dma.done.wait [#allocation6], 1024  }
  0x26   :  { %329 = vsyncadd [#allocation6], 4294966272  ;;  %v336_v0 = vmov 0.0   ;;  %vm337_vm0 = vmmov 0   ;;  %v251_v1 = vld [vmem:[#allocation5] sm:$0xff]   ;;  %v252_v2 = vld [vmem:[#allocation5 + $0x8] sm:$0xff]  }
  0x27   :  { %222 = vmatprep.subr.bf16.mxu0 %v336_v0  ;;  %238 = vmatprep.mubr.msk.bf16.mxu0 %vm337_vm0, %v336_v0  ;;  %v253_v3 = vld [vmem:[#allocation5 + $0x10] sm:$0xff]   ;;  %v254_v4 = vld [vmem:[#allocation5 + $0x18] sm:$0xff]   ;;  %v255_v5 = vld [vmem:[#allocation5 + $0x20] sm:$0xff]   ;;  %s338_s11 = smov [#allocation7]  }
  0x28   :  { %223 = vmatpush3.bf16.msra.mxu0 %v251_v1  ;;  %v256_v6 = vld [vmem:[#allocation5 + $0x28] sm:$0xff]   ;;  %v257_v7 = vld [vmem:[#allocation5 + $0x30] sm:$0xff]   ;;  %v258_v8 = vld [vmem:[#allocation5 + $0x38] sm:$0xff]   ;;  %s190_s12 = sshll.u32 %s338_s11, 4  ;;  %s191_s12 = int_to_ptr.vmem [resolvable:$true] %s190_s12 }
  0x29   :  { %224 = vmatprep.subr.bf16.mxu0 %v336_v0  ;;  %v259_v9 = vld [vmem:[#allocation2] sm:$0xff]   ;;  %s304_s13 = scalar_lea.vmem %s191_s12, 256  ;;  %p309_p3 = scmp.lt.s32.totalorder %s191_s12, %s191_s12 }
  0x2a   :  { %v212_v11 = vld [vmem:[%s402_s2] ss:$0 sm:$0xff]  ;;  %p305_p2 = scmp.ne.s32.totalorder %s191_s12, %s304_s13  ;;  %p310_p4 = scmp.lt.s32.totalorder %s304_s13, %s304_s13 }
  0x2c   :  { %225 = vmatpush3.bf16.msra.mxu0 %v252_v2  ;;  %p311_p5 = por %p310_p4, %p309_p3 }
  0x2d   :  { %226 = vmatprep.subr.bf16.mxu0 %v336_v0 }
  0x2e   :  { %p312_p6 = pnand %p311_p5, %p305_p2 }
  0x30   :  { %227 = vmatpush3.bf16.msra.mxu0 %v253_v3 }
  0x31   :  { %228 = vmatprep.subr.bf16.mxu0 %v336_v0 }
  0x34   :  { %229 = vmatpush3.bf16.msra.mxu0 %v254_v4 }
  0x35   :  { %230 = vmatprep.subr.bf16.mxu0 %v336_v0 }
  0x38   :  { %231 = vmatpush3.bf16.msra.mxu0 %v255_v5 }
  0x39   :  { %232 = vmatprep.subr.bf16.mxu0 %v336_v0 }
  0x3c   :  { %233 = vmatpush3.bf16.msra.mxu0 %v256_v6 }
  0x3d   :  { %234 = vmatprep.subr.bf16.mxu0 %v336_v0 }
  0x40   :  { %235 = vmatpush3.bf16.msra.mxu0 %v257_v7 }
  0x41   :  { %236 = vmatprep.subr.bf16.mxu0 %v336_v0 }
  0x44   :  { %237 = vmatpush3.bf16.msra.mxu0 %v258_v8 }
  0x47   :  { %239 = vmatmul.mubr.bf16.vlgmr.msra.gmra.mrb[0].mxu0 %v259_v9 }
 0x11a   :  { %v158_v10 = vpop.f32.mrb[0].mxu0 }
 0x11b   :  { %v240_v12 = vpop.f32.mrb[1].mxu0  ;;  %v181_v15 = vadd.f32 %v212_v11, %v158_v10 }
 0x11c   :  { %v161_v13 = vpop.f32.mrb[2].mxu0 }
 0x11d   :  { %v241_v14 = vpop.f32.mrb[3].mxu0  ;;  %v182_v16 = vadd.f32 %v212_v11, %v161_v13  ;;  %183 = vst [vmem:[#allocation7] sm:$0xff] %v181_v15 }
 0x11f   :  { %184 = vst [vmem:[#allocation7 + $0x8] sm:$0xff] %v182_v16 }
 0x120   :  { %315 = shalt.err (!%p312_p6)
}
 0x121   :  { %s316_s2 = scalar_lea.hbm %s403_s3, 256 }
 0x122   :  { %p317_p7 = scmp.ne.s32.totalorder %s403_s3, %s316_s2  ;;  %p320_p8 = scmp.lt.u32.totalorder %s316_s2, %s403_s3 }
 0x124   :  { %p322_p9 = pnand %p320_p8, %p317_p7 }
 0x126   :  { %325 = shalt.err (!%p322_p9)
}
 0x127   :  { %s339_s20 = smov 128   ;;  %s340_s21 = smov 8  }
 0x128   :  { %196 = dma.vmem_to_hbm [thread:$0]  %s191_s12, 256, %s403_s3, [#allocation4], %s339_s20, %s339_s20, %s340_s21  }
 0x129   :  { %330 = dma.done.wait [#allocation4], 256  }
 0x12a   :  { %331 = vsyncadd [#allocation4], 4294967040 }
 0x12b   :  { %200 = vsyncpa [#allocation3], 1 }
 0x12c   :  { %201 = vsyncpa [#allocation6], 1 }
 0x12d   :  { %202 = vsyncpa [#allocation4], 1 }

</bundles_post_ra>
